<compile_context>
chip_gen: v7x
topology: tpu7x:2x2x1
jax: 0.10.0
libtpu: 0.0.40
codegen_flags: <defaults>
</compile_context>

<pallas_src>
import jax
import jax.numpy as jnp
from jax.experimental import pallas as pl
from jax.experimental.pallas import tpu as pltpu


def get_node_feature_dims():
    # Deterministic, in-script stand-in for the EGNN helper (OGB-style
    # categorical/one-hot feature widths).
    return [119, 4, 12, 12, 10, 6, 6, 2, 2]


def _round_up(v, m):
    return ((v + m - 1) // m) * m


# ----------------------------- Pallas kernel ------------------------------ #
def node_encoder_kernel(x_ref, w_ref, b_ref, o_ref):
    # x_ref: (tile_n, D) f32   w_ref: (D, E) bf16
    # b_ref: (1, E) f32        o_ref: (tile_n, E) f32
    x_bf16 = x_ref[...].astype(jnp.bfloat16)          # cast in-kernel (free: VPU idle)
    acc = jnp.dot(x_bf16, w_ref[...], preferred_element_type=jnp.float32)
    o_ref[...] = acc + b_ref[...]


def _select_tile_n(n, tile_n):
    # Never use a bigger tile than the (8-aligned) node count needs.
    tile_n = min(tile_n, _round_up(max(n, 8), 8))
    # v7x has 2 TensorCores: for large N keep >=4 grid steps so the
    # "parallel" axis shards/balances; harmless on v5e/v6e (1 TC).
    if n >= 4 * 256:
        tile_n = min(tile_n, max(256, _round_up(pl.cdiv(n, 4), 256)))
    # Sublane alignment for the f32 x block.
    return max(8, (tile_n // 8) * 8)


def node_encoder_pallas(x, w, b, *, tile_n=2048):
    """x: (N, D) f32.  w: (D, E) bf16.  b: (1, E) f32.  Returns (N, E) f32."""
    N, D = x.shape
    D_w, E = w.shape
    assert D == D_w and b.shape == (1, E)

    tile_n = _select_tile_n(N, tile_n)
    grid = (pl.cdiv(N, tile_n),)

    cost = pl.CostEstimate(
        flops=2 * N * D * E,
        transcendentals=0,
        bytes_accessed=4 * N * D + 2 * D * E + 4 * E + 4 * N * E,
    )

    return pl.pallas_call(
        node_encoder_kernel,
        out_shape=jax.ShapeDtypeStruct((N, E), jnp.float32),
        grid=grid,
        in_specs=[
            pl.BlockSpec((tile_n, D), lambda i: (i, 0)),   # x: tiled over nodes
            pl.BlockSpec((D, E), lambda i: (0, 0)),        # W: resident in VMEM
            pl.BlockSpec((1, E), lambda i: (0, 0)),        # b: resident in VMEM
        ],
        out_specs=pl.BlockSpec((tile_n, E), lambda i: (i, 0)),
        compiler_params=pltpu.CompilerParams(
            dimension_semantics=("parallel",),
        ),
        cost_estimate=cost,
    )(x, w, b)


# --------------------------- parameter creation ---------------------------- #
def init_params(key, emb_dim):
    """Deterministic re-implementation of the module's __init__.

    Each Linear(dim, emb_dim):
      weight (emb_dim, dim) -> xavier_uniform_
      bias   (emb_dim,)     -> PyTorch default U(-1/sqrt(dim), 1/sqrt(dim))

    Returns:
      (w bf16 (D_total, emb_dim), b f32 (1, emb_dim))          -- kernel inputs
      (w_cat f32 (D_total, emb_dim), b_sum f32 (1, emb_dim))    -- reference
    """
    dims = get_node_feature_dims()
    w_blocks = []
    b_sum = jnp.zeros((emb_dim,), jnp.float32)
    for dim in dims:
        key, kw, kb = jax.random.split(key, 3)
        bound_w = (6.0 / (dim + emb_dim)) ** 0.5
        w = jax.random.uniform(kw, (emb_dim, dim), jnp.float32,
                               minval=-bound_w, maxval=bound_w)
        bound_b = 1.0 / (dim ** 0.5)
        b = jax.random.uniform(kb, (emb_dim,), jnp.float32,
                               minval=-bound_b, maxval=bound_b)
        # Linear applies x_slice @ W^T, so store W^T for the concatenated matmul.
        w_blocks.append(w.T)
        b_sum = b_sum + b
    w_cat = jnp.concatenate(w_blocks, axis=0)          # (D_total, emb_dim) f32
    return (w_cat.astype(jnp.bfloat16), b_sum.reshape(1, emb_dim)), \
           (w_cat, b_sum.reshape(1, emb_dim))


def reference_forward(x, w_cat, b_sum):
    return x @ w_cat + b_sum


if __name__ == "__main__":
    emb_dim = 32
    dims = get_node_feature_dims()
    D_total = sum(dims)               # 173
    N = 16                            # number of nodes (small test shape)

    key = jax.random.PRNGKey(0)
    key, kx = jax.random.split(key)
    x = jax.random.normal(kx, (N, D_total), jnp.float32)

    (w_bf16, b_f32), (w_f32, b_ref) = init_params(key, emb_dim)

    out = node_encoder_pallas(x, w_bf16, b_f32)
    out = jax.block_until_ready(out)

    ref = reference_forward(x, w_f32, b_ref)
    assert out.shape == (N, emb_dim)
    # bf16 x/W on the MXU (f32 accumulation) -> slightly looser tolerance.
    # Exact for the intended one-hot/categorical x.
    assert jnp.allclose(out, ref, atol=2e-2, rtol=2e-2), (
        float(jnp.max(jnp.abs(out - ref))))

    print("KERNEL_OK")
</pallas_src>

<mosaic_0001>
module attributes {stable_mosaic.version = 11 : i64} {
  func.func @node_encoder_kernel(%arg0: i32, %arg1: memref<16x173xf32, #tpu.memory_space<vmem>>, %arg2: memref<173x32xbf16, #tpu.memory_space<vmem>>, %arg3: memref<1x32xf32, #tpu.memory_space<vmem>>, %arg4: memref<16x32xf32, #tpu.memory_space<vmem>>) attributes {dimension_semantics = [#tpu.dimension_semantics<parallel>], iteration_bounds = array<i64: 1>, scalar_prefetch = 0 : i64, scratch_operands = 0 : i64, tpu.core_type = #tpu.core_type<tc>, window_params = [{transform_indices = @transform_0, window_bounds = array<i64: 16, 173>}, {pipeline_mode = #tpu.pipeline_mode<synchronous>, transform_indices = @transform_1, window_bounds = array<i64: 173, 32>}, {pipeline_mode = #tpu.pipeline_mode<synchronous>, transform_indices = @transform_2, window_bounds = array<i64: 1, 32>}, {transform_indices = @transform_3, window_bounds = array<i64: 16, 32>}]} {
    %c0 = arith.constant 0 : index
    %c0_0 = arith.constant 0 : index
    %0 = vector.load %arg1[%c0, %c0_0] : memref<16x173xf32, #tpu.memory_space<vmem>>, vector<16x173xf32>
    %1 = arith.truncf %0 : vector<16x173xf32> to vector<16x173xbf16>
    %c0_1 = arith.constant 0 : index
    %c0_2 = arith.constant 0 : index
    %2 = vector.load %arg2[%c0_1, %c0_2] : memref<173x32xbf16, #tpu.memory_space<vmem>>, vector<173x32xbf16>
    %cst = arith.constant dense<0.000000e+00> : vector<16x32xf32>
    %3 = tpu.matmul %1, %2, %cst {dimension_numbers = #tpu.dot_dimension_numbers<[1], [0], [0], [1], [0, 0, 1, 1], [], []>} : vector<16x173xbf16>, vector<173x32xbf16>, vector<16x32xf32> -> vector<16x32xf32>
    %c0_3 = arith.constant 0 : index
    %c0_4 = arith.constant 0 : index
    %4 = vector.load %arg3[%c0_3, %c0_4] : memref<1x32xf32, #tpu.memory_space<vmem>>, vector<1x32xf32>
    %5 = vector.broadcast %4 : vector<1x32xf32> to vector<16x32xf32>
    %6 = arith.addf %3, %5 : vector<16x32xf32>
    %c0_5 = arith.constant 0 : index
    %c0_6 = arith.constant 0 : index
    %7 = vector.load %arg4[%c0_5, %c0_6] : memref<16x32xf32, #tpu.memory_space<vmem>>, vector<16x32xf32>
    tpu.vector_store %arg4[%c0_5, %c0_6], %6 {strides = array<i32>} : memref<16x32xf32, #tpu.memory_space<vmem>>, vector<16x32xf32>,
    return
  }
  func.func @transform_0(%arg0: i32) -> (i32, i32) {
    %c0_i32 = arith.constant 0 : i32
    %c0_i32_0 = arith.constant 0 : i32
    return %arg0, %c0_i32 : i32, i32
  }
  func.func @transform_1(%arg0: i32) -> (i32, i32) {
    %c0_i32 = arith.constant 0 : i32
    %c0_i32_0 = arith.constant 0 : i32
    %c0_i32_1 = arith.constant 0 : i32
    return %c0_i32, %c0_i32_0 : i32, i32
  }
  func.func @transform_2(%arg0: i32) -> (i32, i32) {
    %c0_i32 = arith.constant 0 : i32
    %c0_i32_0 = arith.constant 0 : i32
    %c0_i32_1 = arith.constant 0 : i32
    return %c0_i32, %c0_i32_0 : i32, i32
  }
  func.func @transform_3(%arg0: i32) -> (i32, i32) {
    %c0_i32 = arith.constant 0 : i32
    %c0_i32_0 = arith.constant 0 : i32
    return %arg0, %c0_i32 : i32, i32
  }
}

</mosaic_0001>

<bundles_post_ra>
// kernel: tpu_custom_call.1
= control target key start
LH: loop header
LB: loop body
LE: loop exit
PB: predicated region body
PF: predicated region fallthrough
CT: control target
= control target key end

     0   :  { %v240_v1 = vmov 0   ;;  %vm116_vm0 = vcmask 367616   ;;  %s325_s0 = inlined_call_operand.vmem [shape: f32[16,173], index: 0, kind: input, shape index: {}]   ;;  %s326_s1 = inlined_call_operand.vmem [shape: bf16[173,32], index: 1, kind: input, shape index: {}]   ;;  %s327_s2 = inlined_call_operand.vmem [shape: f32[1,32], index: 2, kind: input, shape index: {}]   ;;  %s328_s3 = inlined_call_operand.hbm [shape: f32[16,32], index: 3, kind: output, shape index: {}]  }
   0x1   :  { %v205_v0 = vld [vmem:[%s326_s1] sm:$0xff]   ;;  %127 = vmatprep.subr.bf16.mxu0 %v240_v1  ;;  %v206_v2 = vld [vmem:[%s326_s1 + $0x8] sm:$0xff]   ;;  %v207_v3 = vld [vmem:[%s326_s1 + $0x10] sm:$0xff]  }
   0x2   :  { %128 = vmatpush1.bf16.msra.mxu0 %v205_v0  ;;  %v208_v4 = vld [vmem:[%s326_s1 + $0x18] sm:$0xff]   ;;  %v17_v5 = vld [vmem:[%s325_s0 + $0x8] sm:$0xff] }
   0x3   :  { %129 = vmatprep.subr.bf16.mxu0 %v240_v1  ;;  %v19_v6 = vld [vmem:[%s325_s0 + $0x18] sm:$0xff] }
   0x4   :  { %v21_v7 = vpack.c.bf16 %v19_v6, %v17_v5 }
   0x6   :  { %130 = vmatpush1.bf16.msra.mxu0 %v206_v2 }
   0x7   :  { %131 = vmatprep.subr.bf16.mxu0 %v240_v1 }
   0xa   :  { %132 = vmatpush1.bf16.msra.mxu0 %v207_v3 }
   0xb   :  { %133 = vmatprep.subr.bf16.mxu0 %v240_v1 }
   0xc   :  { %8 = vsyncpa [#allocation3], 0  ;;  %v209_v8 = vld [vmem:[%s326_s1 + $0x20] sm:$0xff]   ;;  %199 = vmatprep.mubr.msk.bf16.mxu0 %vm116_vm0, %v21_v7  ;;  %v210_v9 = vld [vmem:[%s326_s1 + $0x28] sm:$0xff]   ;;  %vm120_vm1 = vcmask 1045504   ;;  %vm121_vm2 = vcmask 1046528  }
   0xd   :  { %v211_v10 = vld [vmem:[%s326_s1 + $0x30] sm:$0xff]   ;;  %v212_v11 = vld [vmem:[%s326_s1 + $0x38] sm:$0xff]   ;;  %v213_v12 = vld [vmem:[%s326_s1 + $0x40] sm:$0xff]   ;;  %v241_v13 = vmov 65535   ;;  %vm168_vm3 = vcmask 261120  }
   0xe   :  { %134 = vmatpush1.bf16.msra.mxu0 %v208_v4  ;;  %v122_v14 = vsel %vm120_vm1, 4294967295, %v241_v13  ;;  %v214_v15 = vld [vmem:[%s326_s1 + $0x48] sm:$0xff]   ;;  %v215_v16 = vld [vmem:[%s326_s1 + $0x50] sm:$0x7f]   ;;  %v16_v19 = vld [vmem:[%s325_s0] sm:$0xff]  ;;  %s242_s1 = smov [#allocation2]  }
   0xf   :  { %135 = vmatprep.subr.bf16.mxu0 %v240_v1  ;;  %v123_v17 = vsel %vm121_vm2, %v122_v14, 0  ;;  %v18_v20 = vld [vmem:[%s325_s0 + $0x10] sm:$0xff]  ;;  %v187_v22 = vld [vmem:[%s327_s2] ss:$0 sm:$0xff]  ;;  %s176_s17 = sshll.u32 %s242_s1, 4  ;;  %s177_s17 = int_to_ptr.vmem [resolvable:$true] %s176_s17 }
  0x10   :  { %v125_v18 = vand.u32 %v215_v16, %v123_v17  ;;  %v20_v21 = vpack.c.bf16 %v18_v20, %v16_v19  ;;  %s216_s0 = scalar_lea.vmem %s177_s17, 256  ;;  %p221_p1 = scmp.lt.s32.totalorder %s177_s17, %s177_s17 }
  0x11   :  { %p217_p0 = scmp.ne.s32.totalorder %s177_s17, %s216_s0  ;;  %p222_p2 = scmp.lt.s32.totalorder %s216_s0, %s216_s0 }
  0x12   :  { %136 = vmatpush1.bf16.msra.mxu0 %v209_v8 }
  0x13   :  { %137 = vmatprep.subr.bf16.mxu0 %v240_v1  ;;  %p223_p3 = por %p222_p2, %p221_p1 }
  0x15   :  { %p224_p4 = pnand %p223_p3, %p217_p0 }
  0x16   :  { %138 = vmatpush1.bf16.msra.mxu0 %v210_v9 }
  0x17   :  { %139 = vmatprep.subr.bf16.mxu0 %v240_v1 }
  0x1a   :  { %140 = vmatpush1.bf16.msra.mxu0 %v211_v10 }
  0x1b   :  { %141 = vmatprep.subr.bf16.mxu0 %v240_v1 }
  0x1e   :  { %142 = vmatpush1.bf16.msra.mxu0 %v212_v11 }
  0x1f   :  { %143 = vmatprep.subr.bf16.mxu0 %v240_v1 }
  0x22   :  { %144 = vmatpush1.bf16.msra.mxu0 %v213_v12 }
  0x23   :  { %145 = vmatprep.subr.bf16.mxu0 %v240_v1 }
  0x26   :  { %146 = vmatpush1.bf16.msra.mxu0 %v214_v15 }
  0x27   :  { %147 = vmatprep.subr.bf16.mxu0 %v240_v1 }
  0x2a   :  { %148 = vmatpush1.bf16.msra.mxu0 %v125_v18 }
  0x2d   :  { %160 = vmatmul.mubr.bf16.vlgmr.msra.gmra.mrb[0].mxu0 %v20_v21 }
 0x100   :  { %v161_v23 = vpop.f32.mrb[0].mxu0 }
 0x101   :  { %v162_v24 = vadd.f32 %v187_v22, %v161_v23  ;;  %v163_v25 = vpop.f32.mrb[1].mxu0 }
 0x102   :  { %v164_v26 = vpop.f32.mrb[2].mxu0 }
 0x103   :  { %169 = vst.msk [vmem:[#allocation2] sm:$0xff] %vm168_vm3, %v162_v24  ;;  %v165_v27 = vadd.f32 %v187_v22, %v164_v26  ;;  %v166_v28 = vpop.f32.mrb[3].mxu0 }
 0x105   :  { %170 = vst.msk [vmem:[#allocation2 + $0x8] sm:$0xff] %vm168_vm3, %v165_v27 }
 0x106   :  { %227 = shalt.err (!%p224_p4)
}
 0x107   :  { %s228_s19 = scalar_lea.hbm %s328_s3, 256 }
 0x108   :  { %p229_p5 = scmp.ne.s32.totalorder %s328_s3, %s228_s19  ;;  %p232_p6 = scmp.lt.u32.totalorder %s228_s19, %s328_s3 }
 0x10a   :  { %p234_p7 = pnand %p232_p6, %p229_p5 }
 0x10c   :  { %237 = shalt.err (!%p234_p7)
}
 0x10d   :  { %s243_s24 = smov 128   ;;  %s244_s25 = smov 8  }
 0x10e   :  { %182 = dma.vmem_to_hbm [thread:$0]  %s177_s17, 256, %s328_s3, [#allocation3], %s243_s24, %s243_s24, %s244_s25  }
 0x10f   :  { %238 = dma.done.wait [#allocation3], 256  }
 0x110   :  { %239 = vsyncadd [#allocation3], 4294967040 }
 0x111   :  { %186 = vsyncpa [#allocation3], 1 }

</bundles_post_ra>
